<compile_context>
chip_gen: v5e
topology: v5e:2x2
jax: 0.10.0
libtpu: 0.0.40
codegen_flags: <defaults>
</compile_context>

<pallas_src>
import jax
import jax.numpy as jnp
from jax.experimental import pallas as pl
from jax.experimental.pallas import tpu as pltpu

N_EMBD = 64


def _newhead_kernel(x_ref, w_ref, o_ref):
    # x_ref: (tb, C) last-step activations, w_ref: (1, C), o_ref: (tb, 1)
    x = x_ref[...].astype(jnp.float32)                   # f32 compute path
    w = w_ref[...].astype(jnp.float32)                   # (1, C), sublane-bcast
    logits = jnp.sum(x * w, axis=-1, keepdims=True)      # VPU mul + lane reduce
    o_ref[...] = jax.nn.sigmoid(logits).astype(o_ref.dtype)  # EUP sigmoid


def _round_up(v, m):
    return ((v + m - 1) // m) * m


def _pick_tile(B, max_tb=4096):
    """Batch-tile size: single step for small B, balanced even #steps otherwise."""
    if B <= 1024:
        return B
    n = max(2, pl.cdiv(B, max_tb))
    if n % 2:
        n += 1                       # even step count -> both v7x TCs participate
    return _round_up(pl.cdiv(B, n), 8)


def newhead_forward(x, weight, *, force_tb=None):
    """x: (B, T, C), weight: (1, C) -> sigmoid(x[:, -1, :] @ weight.T).squeeze()"""
    B, T, C = x.shape

    # Only the last time step is needed; slice before the kernel so the
    # pallas_call never touches the other T-1 steps.
    x_last = x[:, -1, :]                                  # (B, C)

    tb = force_tb if force_tb is not None else _pick_tile(B)
    grid = (pl.cdiv(B, tb),)

    out = pl.pallas_call(
        _newhead_kernel,
        out_shape=jax.ShapeDtypeStruct((B, 1), jnp.float32),
        grid_spec=pltpu.PrefetchScalarGridSpec(
            num_scalar_prefetch=0,
            grid=grid,
            in_specs=[
                pl.BlockSpec((tb, C), lambda i: (i, 0)),   # last-step batch tile
                pl.BlockSpec((1, C), lambda i: (0, 0)),    # weight, resident
            ],
            out_specs=pl.BlockSpec((tb, 1), lambda i: (i, 0)),  # batch on sublanes
        ),
        compiler_params=pltpu.CompilerParams(
            dimension_semantics=("parallel",),
        ),
    )(x_last, weight)

    # torch .squeeze(): (B,) for B > 1, 0-d scalar for B == 1.
    return jnp.squeeze(out)


if __name__ == "__main__":
    key = jax.random.PRNGKey(0)
    kx, kw = jax.random.split(key)

    B, T, C = 2, 8, N_EMBD
    x = jax.random.normal(kx, (B, T, C), dtype=jnp.float32)
    weight = jax.random.normal(kw, (1, C), dtype=jnp.float32)
    # The PyTorch module declares a bias but never applies it in forward();
    # it is intentionally unused here for exact parity.

    out = jax.block_until_ready(newhead_forward(x, weight))
    ref = jnp.squeeze(jax.nn.sigmoid(x[:, -1, :] @ weight.T))
    assert out.shape == ref.shape, (out.shape, ref.shape)
    assert jnp.allclose(out, ref, atol=1e-5, rtol=1e-5), (out, ref)

    # Multi-tile path with a partial last tile (B not a multiple of the tile):
    # exercises Pallas' clipped/masked handling of the final block, per the
    # review's correctness concern, while staying at a small shape.
    B2 = 20
    x2 = jax.random.normal(jax.random.PRNGKey(1), (B2, T, C), dtype=jnp.float32)
    out2 = jax.block_until_ready(newhead_forward(x2, weight, force_tb=8))
    ref2 = jnp.squeeze(jax.nn.sigmoid(x2[:, -1, :] @ weight.T))
    assert out2.shape == ref2.shape, (out2.shape, ref2.shape)
    assert jnp.allclose(out2, ref2, atol=1e-5, rtol=1e-5), (out2, ref2)

    print("KERNEL_OK")
</pallas_src>

<mosaic_0001>
module attributes {stable_mosaic.version = 11 : i64} {
  func.func @_newhead_kernel(%arg0: i32, %arg1: memref<2x64xf32, #tpu.memory_space<vmem>>, %arg2: memref<1x64xf32, #tpu.memory_space<vmem>>, %arg3: memref<2x1xf32, #tpu.memory_space<vmem>>) attributes {dimension_semantics = [#tpu.dimension_semantics<parallel>], iteration_bounds = array<i64: 1>, scalar_prefetch = 0 : i64, scratch_operands = 0 : i64, tpu.core_type = #tpu.core_type<tc>, window_params = [{transform_indices = @transform_0, window_bounds = array<i64: 2, 64>}, {pipeline_mode = #tpu.pipeline_mode<synchronous>, transform_indices = @transform_1, window_bounds = array<i64: 1, 64>}, {transform_indices = @transform_2, window_bounds = array<i64: 2, 1>}]} {
    %c0 = arith.constant 0 : index
    %c0_0 = arith.constant 0 : index
    %0 = vector.load %arg1[%c0, %c0_0] : memref<2x64xf32, #tpu.memory_space<vmem>>, vector<2x64xf32>
    %c0_1 = arith.constant 0 : index
    %c0_2 = arith.constant 0 : index
    %1 = vector.load %arg2[%c0_1, %c0_2] : memref<1x64xf32, #tpu.memory_space<vmem>>, vector<1x64xf32>
    %2 = vector.broadcast %1 : vector<1x64xf32> to vector<2x64xf32>
    %3 = arith.mulf %0, %2 : vector<2x64xf32>
    %cst = arith.constant dense<0.000000e+00> : vector<2xf32>
    %4 = vector.multi_reduction <add>, %3, %cst [1] : vector<2x64xf32> to vector<2xf32>
    %5 = vector.shape_cast %4 : vector<2xf32> to vector<2x1xf32>
    %6 = arith.negf %5 : vector<2x1xf32>
    %7 = math.exp %6 : vector<2x1xf32>
    %cst_3 = arith.constant 1.000000e+00 : f32
    %8 = vector.broadcast %cst_3 : f32 to vector<2x1xf32>
    %9 = arith.addf %8, %7 : vector<2x1xf32>
    %10 = arith.divf %8, %9 : vector<2x1xf32>
    %c0_4 = arith.constant 0 : index
    %c0_5 = arith.constant 0 : index
    %11 = vector.load %arg3[%c0_4, %c0_5] : memref<2x1xf32, #tpu.memory_space<vmem>>, vector<2x1xf32>
    tpu.vector_store %arg3[%c0_4, %c0_5], %10 {strides = array<i32>} : memref<2x1xf32, #tpu.memory_space<vmem>>, vector<2x1xf32>,
    return
  }
  func.func @transform_0(%arg0: i32) -> (i32, i32) {
    %c0_i32 = arith.constant 0 : i32
    %c0_i32_0 = arith.constant 0 : i32
    return %arg0, %c0_i32 : i32, i32
  }
  func.func @transform_1(%arg0: i32) -> (i32, i32) {
    %c0_i32 = arith.constant 0 : i32
    %c0_i32_0 = arith.constant 0 : i32
    %c0_i32_1 = arith.constant 0 : i32
    return %c0_i32, %c0_i32_0 : i32, i32
  }
  func.func @transform_2(%arg0: i32) -> (i32, i32) {
    %c0_i32 = arith.constant 0 : i32
    %c0_i32_0 = arith.constant 0 : i32
    return %arg0, %c0_i32 : i32, i32
  }
}

</mosaic_0001>

<bundles_post_ra>
// kernel: tpu_custom_call.1
= control target key start
LH: loop header
LB: loop body
LE: loop exit
PB: predicated region body
PF: predicated region fallthrough
CT: control target
= control target key end

     0   :  { %7 = vsyncpa [#allocation3], 0  ;;  %s162_s0 = inlined_call_operand.hbm [shape: f32[2,64], index: 0, kind: input, shape index: {}]   ;;  %s163_s1 = inlined_call_operand.hbm [shape: f32[1,64], index: 1, kind: input, shape index: {}]   ;;  %s164_s2 = inlined_call_operand.vmem [shape: f32[2,1], index: 2, kind: output, shape index: {}]  }
   0x1   :  { %s14_s11 = sshll.u32 %s162_s0, 4  ;;  %s15_s11 = int_to_ptr.hbm [resolvable:$true] %s14_s11 }
   0x2   :  { %8 = vsyncpa [#allocation5], 0  ;;  %s136_s12 = smov [#allocation2]   ;;  %s25_s16 = sshll.u32 %s163_s1, 4  ;;  %s26_s16 = int_to_ptr.hbm [resolvable:$true] %s25_s16 }
   0x3   :  { %s16_s13 = sshll.u32 %s136_s12, 4  ;;  %s137_s17 = smov [#allocation4]   ;;  %s17_s13 = int_to_ptr.vmem [resolvable:$true] %s16_s13 }
   0x4   :  { %19 = dma.hbm_to_vmem [thread:$0]  %s15_s11, 32, %s17_s13, [#allocation3]  }
   0x5   :  { %s27_s18 = sshll.u32 %s137_s17, 4  ;;  %s28_s18 = int_to_ptr.vmem [resolvable:$true] %s27_s18 }
   0x6   :  { %30 = dma.hbm_to_vmem [thread:$0]  %s26_s16, 16, %s28_s18, [#allocation5]  }
   0x7   :  { %132 = dma.done.wait [#allocation3], 32  }
   0x8   :  { %133 = vsyncadd [#allocation3], 4294967264 }
   0x9   :  { %134 = dma.done.wait [#allocation5], 16  }
   0xa   :  { %135 = vsyncadd [#allocation5], 4294967280  ;;  %v39_v0 = vld [vmem:[#allocation2] sm:$0x3]  ;;  %v79_v1 = vld [vmem:[#allocation4] ss:$0 sm:$0xff] }
   0xb   :  { %vm45_vm0 = vcmask 517120   ;;  %v44_v2 = vmul.f32 %v79_v1, %v39_v0  ;;  %vm68_vm4 = vcmask 1024  }
   0xd   :  { %v46_v3 = vsel %vm45_vm0, %v44_v2, 0.0 }
   0xe   :  { %47 = vadd.xlane.f32.xlu0 %v46_v3 }
  0x81   :  { %v48_v4 = vpop.xlane.xlu0 %47 }
  0x82   :  { %v76_v5 = vmul.f32 -1.442695, %v48_v4 }
  0x84   :  { %80 = vpow2.f32 %v76_v5 }
  0x8a   :  { %v81_v6 = vpop.eup %80 }
  0x8b   :  { %v52_v7 = vadd.f32 1.0, %v81_v6 }
  0x8d   :  { %82 = vrcp.f32 %v52_v7  ;;  %v64_v11 = vand.u32 2147483648, %v52_v7  ;;  %v62_v13 = vand.u32 2147483647, %v52_v7  ;;  %vm58_vm2 = vweird.f32 %v52_v7 }
  0x8f   :  { %v65_v15 = vor.u32 1.1754944e-38, %v64_v11  ;;  %vm63_vm5 = vcmp.eq.f32.partialorder %v62_v13, 8.507059e+37 }
  0x93   :  { %v83_v8 = vpop.eup %82 }
  0x94   :  { %v54_v9 = vmul.f32 %v83_v8, %v52_v7  ;;  %vm59_vm1 = vweird.f32 %v83_v8 }
  0x95   :  { %vm60_vm3 = vmor %vm58_vm2, %vm59_vm1 }
  0x96   :  { %v55_v10 = vsub.f32 1.0, %v54_v9 }
  0x98   :  { %v56_v12 = vmul.f32 %v83_v8, %v55_v10 }
  0x9a   :  { %v57_v14 = vadd.f32 %v83_v8, %v56_v12 }
  0x9c   :  { %v61_v16 = vsel %vm60_vm3, %v83_v8, %v57_v14 }
  0x9d   :  { %v66_v17 = vsel %vm63_vm5, %v65_v15, %v61_v16 }
  0x9e   :  { %69 = vst.msk [vmem:[%s164_s2] sm:$0x3] %vm68_vm4, %v66_v17 }
  0x9f   :  { %74 = vsyncpa [#allocation3], 1 }
  0xa0   :  { %75 = vsyncpa [#allocation5], 1 }

</bundles_post_ra>
